<compile_context>
chip_gen: v7x
topology: tpu7x:2x2x1
jax: 0.10.0
libtpu: 0.0.40
codegen_flags: <defaults>
</compile_context>

<pallas_src>
import jax
import jax.numpy as jnp
from jax.experimental import pallas as pl
from jax.experimental.pallas import tpu as pltpu

B, C, H, W = 2, 8, 16, 16   # W * C = 128 -> lane-dense fused axis


def chann_attn_kernel(x_ref, w_ref, b_ref, o_ref):
    x = x_ref[...]                                   # (B, H, W*C) f32, lane-dense
    Bn, Hn, WC = x.shape
    Cn = w_ref.shape[1]
    Wn = WC // Cn

    # ---- global average pool per (batch, channel) ----
    # sublane reduce over H, then fold the W groups that live inside the
    # 128-lane fused axis (tiny (B,128) relayout).
    s = jnp.sum(x, axis=1)                           # (B, W*C)
    s = jnp.sum(s.reshape(Bn, Wn, Cn), axis=1)       # (B, C)
    mean = s * (1.0 / (Hn * Wn))                     # (B, C)

    w1 = w_ref[0]                                    # (C, C)   x @ w1 == conv_1
    w2 = w_ref[1]                                    # (C, C)
    b1 = b_ref[0]                                    # (1, C)
    b2 = b_ref[1]                                    # (1, C)

    # ---- 1x1-conv MLP on the pooled vector, kept on VPU/XLU (no MXU) ----
    # h[b, j] = relu(sum_i mean[b, i] * w1[i, j] + b1[j])
    h = jnp.maximum(
        jnp.sum(mean[:, :, None] * w1[None, :, :], axis=1) + b1, 0.0)        # (B, C)
    a = jax.nn.sigmoid(
        jnp.sum(h[:, :, None] * w2[None, :, :], axis=1) + b2)                # (B, C)

    # ---- broadcast attention weights over the fused W*C lane axis ----
    # lane l = w*C + c  ->  a[b, l % C]
    a_lanes = jnp.tile(a, (1, Wn))                   # (B, W*C)
    o_ref[...] = x * a_lanes[:, None, :]             # lane-dense multiply + store


def chann_attn(x_nhwc, w, b):
    Bn, Hn, Wn, Cn = x_nhwc.shape
    x2 = x_nhwc.reshape(Bn, Hn, Wn * Cn)             # lane-dense view (done host-side)

    out = pl.pallas_call(
        chann_attn_kernel,
        out_shape=jax.ShapeDtypeStruct((Bn, Hn, Wn * Cn), jnp.float32),
        grid_spec=pltpu.PrefetchScalarGridSpec(
            num_scalar_prefetch=0,
            grid=(1,),                               # whole batch in one step
            in_specs=[
                pl.BlockSpec((Bn, Hn, Wn * Cn), lambda i: (0, 0, 0)),
                pl.BlockSpec(w.shape, lambda i: (0, 0, 0)),
                pl.BlockSpec(b.shape, lambda i: (0, 0, 0)),
            ],
            out_specs=pl.BlockSpec((Bn, Hn, Wn * Cn), lambda i: (0, 0, 0)),
        ),
        compiler_params=pltpu.CompilerParams(
            dimension_semantics=("arbitrary",)),
    )(x2, w, b)
    return out.reshape(Bn, Hn, Wn, Cn)


def ref_forward(x_nhwc, w, b):
    m = x_nhwc.mean(axis=(1, 2))                     # (B, C) global avg pool
    h = jnp.maximum(m @ w[0] + b[0], 0.0)            # relu(conv_1(pool))
    a = jax.nn.sigmoid(h @ w[1] + b[1])              # sigmoid(conv_2(...))
    return x_nhwc * a[:, None, None, :]


if __name__ == "__main__":
    key = jax.random.PRNGKey(0)
    kx, kw, kb = jax.random.split(key, 3)

    # PyTorch forward takes NCHW (B, C, H, W); kernel works in NHWC (lane-dense).
    x_nchw = jax.random.normal(kx, (B, C, H, W), jnp.float32)
    x_nhwc = jnp.transpose(x_nchw, (0, 2, 3, 1))

    # Packed params: w[k] = conv_k.weight[:, :, 0, 0].T  (Cin, Cout), b[k] = bias.
    w = jax.random.normal(kw, (2, C, C), jnp.float32) * 0.1
    b = jax.random.normal(kb, (2, 1, C), jnp.float32) * 0.01

    out = jax.block_until_ready(chann_attn(x_nhwc, w, b))
    ref = jax.block_until_ready(ref_forward(x_nhwc, w, b))

    assert out.shape == (B, H, W, C)
    max_err = float(jnp.max(jnp.abs(out - ref)))
    assert jnp.allclose(out, ref, atol=1e-4, rtol=1e-4), max_err
    print("KERNEL_OK")
</pallas_src>

<mosaic_0001>
module attributes {stable_mosaic.version = 11 : i64} {
  func.func @chann_attn_kernel(%arg0: i32, %arg1: memref<2x16x128xf32, #tpu.memory_space<vmem>>, %arg2: memref<2x8x8xf32, #tpu.memory_space<vmem>>, %arg3: memref<2x1x8xf32, #tpu.memory_space<vmem>>, %arg4: memref<2x16x128xf32, #tpu.memory_space<vmem>>) attributes {dimension_semantics = [#tpu.dimension_semantics<arbitrary>], iteration_bounds = array<i64: 1>, scalar_prefetch = 0 : i64, scratch_operands = 0 : i64, tpu.core_type = #tpu.core_type<tc>, window_params = [{pipeline_mode = #tpu.pipeline_mode<synchronous>, transform_indices = @transform_0, window_bounds = array<i64: 2, 16, 128>}, {pipeline_mode = #tpu.pipeline_mode<synchronous>, transform_indices = @transform_1, window_bounds = array<i64: 2, 8, 8>}, {pipeline_mode = #tpu.pipeline_mode<synchronous>, transform_indices = @transform_2, window_bounds = array<i64: 2, 1, 8>}, {pipeline_mode = #tpu.pipeline_mode<synchronous>, transform_indices = @transform_3, window_bounds = array<i64: 2, 16, 128>}]} {
    %c0 = arith.constant 0 : index
    %c0_0 = arith.constant 0 : index
    %c0_1 = arith.constant 0 : index
    %0 = vector.load %arg1[%c0, %c0_0, %c0_1] : memref<2x16x128xf32, #tpu.memory_space<vmem>>, vector<2x16x128xf32>
    %cst = arith.constant dense<0.000000e+00> : vector<2x128xf32>
    %1 = vector.multi_reduction <add>, %0, %cst [1] : vector<2x16x128xf32> to vector<2x128xf32>
    %2 = vector.shape_cast %1 : vector<2x128xf32> to vector<2x16x8xf32>
    %cst_2 = arith.constant dense<0.000000e+00> : vector<2x8xf32>
    %3 = vector.multi_reduction <add>, %2, %cst_2 [1] : vector<2x16x8xf32> to vector<2x8xf32>
    %cst_3 = arith.constant 3.906250e-03 : f32
    %4 = vector.broadcast %cst_3 : f32 to vector<2x8xf32>
    %5 = arith.mulf %3, %4 : vector<2x8xf32>
    %c0_4 = arith.constant 0 : index
    %c0_5 = arith.constant 0 : index
    %c0_6 = arith.constant 0 : index
    %6 = vector.load %arg2[%c0_4, %c0_5, %c0_6] : memref<2x8x8xf32, #tpu.memory_space<vmem>>, vector<1x8x8xf32>
    %7 = vector.shape_cast %6 : vector<1x8x8xf32> to vector<8x8xf32>
    %c1 = arith.constant 1 : index
    %c0_7 = arith.constant 0 : index
    %c0_8 = arith.constant 0 : index
    %8 = vector.load %arg2[%c1, %c0_7, %c0_8] : memref<2x8x8xf32, #tpu.memory_space<vmem>>, vector<1x8x8xf32>
    %9 = vector.shape_cast %8 : vector<1x8x8xf32> to vector<8x8xf32>
    %c0_9 = arith.constant 0 : index
    %c0_10 = arith.constant 0 : index
    %c0_11 = arith.constant 0 : index
    %10 = vector.load %arg3[%c0_9, %c0_10, %c0_11] : memref<2x1x8xf32, #tpu.memory_space<vmem>>, vector<1x1x8xf32>
    %11 = vector.shape_cast %10 : vector<1x1x8xf32> to vector<1x8xf32>
    %c1_12 = arith.constant 1 : index
    %c0_13 = arith.constant 0 : index
    %c0_14 = arith.constant 0 : index
    %12 = vector.load %arg3[%c1_12, %c0_13, %c0_14] : memref<2x1x8xf32, #tpu.memory_space<vmem>>, vector<1x1x8xf32>
    %13 = vector.shape_cast %12 : vector<1x1x8xf32> to vector<1x8xf32>
    %14 = vector.shape_cast %5 : vector<2x8xf32> to vector<2x8x1xf32>
    %15 = vector.shape_cast %7 : vector<8x8xf32> to vector<1x8x8xf32>
    %16 = vector.broadcast %14 : vector<2x8x1xf32> to vector<2x8x8xf32>
    %17 = vector.broadcast %15 : vector<1x8x8xf32> to vector<2x8x8xf32>
    %18 = arith.mulf %16, %17 : vector<2x8x8xf32>
    %cst_15 = arith.constant dense<0.000000e+00> : vector<2x8xf32>
    %19 = vector.multi_reduction <add>, %18, %cst_15 [1] : vector<2x8x8xf32> to vector<2x8xf32>
    %20 = vector.broadcast %11 : vector<1x8xf32> to vector<2x8xf32>
    %21 = arith.addf %19, %20 : vector<2x8xf32>
    %cst_16 = arith.constant 0.000000e+00 : f32
    %22 = vector.broadcast %cst_16 : f32 to vector<2x8xf32>
    %23 = arith.maximumf %21, %22 : vector<2x8xf32>
    %24 = vector.shape_cast %23 : vector<2x8xf32> to vector<2x8x1xf32>
    %25 = vector.shape_cast %9 : vector<8x8xf32> to vector<1x8x8xf32>
    %26 = vector.broadcast %24 : vector<2x8x1xf32> to vector<2x8x8xf32>
    %27 = vector.broadcast %25 : vector<1x8x8xf32> to vector<2x8x8xf32>
    %28 = arith.mulf %26, %27 : vector<2x8x8xf32>
    %cst_17 = arith.constant dense<0.000000e+00> : vector<2x8xf32>
    %29 = vector.multi_reduction <add>, %28, %cst_17 [1] : vector<2x8x8xf32> to vector<2x8xf32>
    %30 = vector.broadcast %13 : vector<1x8xf32> to vector<2x8xf32>
    %31 = arith.addf %29, %30 : vector<2x8xf32>
    %32 = arith.negf %31 : vector<2x8xf32>
    %33 = math.exp %32 : vector<2x8xf32>
    %cst_18 = arith.constant 1.000000e+00 : f32
    %34 = vector.broadcast %cst_18 : f32 to vector<2x8xf32>
    %35 = arith.addf %34, %33 : vector<2x8xf32>
    %36 = arith.divf %34, %35 : vector<2x8xf32>
    %37 = tpu.concatenate %36, %36, %36, %36, %36, %36, %36, %36, %36, %36, %36, %36, %36, %36, %36, %36 in 1 : vector<2x8xf32>, vector<2x8xf32>, vector<2x8xf32>, vector<2x8xf32>, vector<2x8xf32>, vector<2x8xf32>, vector<2x8xf32>, vector<2x8xf32>, vector<2x8xf32>, vector<2x8xf32>, vector<2x8xf32>, vector<2x8xf32>, vector<2x8xf32>, vector<2x8xf32>, vector<2x8xf32>, vector<2x8xf32> -> vector<2x128xf32>
    %38 = vector.shape_cast %37 : vector<2x128xf32> to vector<2x1x128xf32>
    %39 = vector.broadcast %38 : vector<2x1x128xf32> to vector<2x16x128xf32>
    %40 = arith.mulf %0, %39 : vector<2x16x128xf32>
    %c0_19 = arith.constant 0 : index
    %c0_20 = arith.constant 0 : index
    %c0_21 = arith.constant 0 : index
    %41 = vector.load %arg4[%c0_19, %c0_20, %c0_21] : memref<2x16x128xf32, #tpu.memory_space<vmem>>, vector<2x16x128xf32>
    tpu.vector_store %arg4[%c0_19, %c0_20, %c0_21], %40 {strides = array<i32>} : memref<2x16x128xf32, #tpu.memory_space<vmem>>, vector<2x16x128xf32>,
    return
  }
  func.func @transform_0(%arg0: i32) -> (i32, i32, i32) {
    %c0_i32 = arith.constant 0 : i32
    %c0_i32_0 = arith.constant 0 : i32
    %c0_i32_1 = arith.constant 0 : i32
    %c0_i32_2 = arith.constant 0 : i32
    return %c0_i32, %c0_i32_0, %c0_i32_1 : i32, i32, i32
  }
  func.func @transform_1(%arg0: i32) -> (i32, i32, i32) {
    %c0_i32 = arith.constant 0 : i32
    %c0_i32_0 = arith.constant 0 : i32
    %c0_i32_1 = arith.constant 0 : i32
    %c0_i32_2 = arith.constant 0 : i32
    return %c0_i32, %c0_i32_0, %c0_i32_1 : i32, i32, i32
  }
  func.func @transform_2(%arg0: i32) -> (i32, i32, i32) {
    %c0_i32 = arith.constant 0 : i32
    %c0_i32_0 = arith.constant 0 : i32
    %c0_i32_1 = arith.constant 0 : i32
    %c0_i32_2 = arith.constant 0 : i32
    return %c0_i32, %c0_i32_0, %c0_i32_1 : i32, i32, i32
  }
  func.func @transform_3(%arg0: i32) -> (i32, i32, i32) {
    %c0_i32 = arith.constant 0 : i32
    %c0_i32_0 = arith.constant 0 : i32
    %c0_i32_1 = arith.constant 0 : i32
    %c0_i32_2 = arith.constant 0 : i32
    return %c0_i32, %c0_i32_0, %c0_i32_1 : i32, i32, i32
  }
}

</mosaic_0001>

<bundles_post_ra>
// kernel: tpu_custom_call.1
= control target key start
LH: loop header
LB: loop body
LE: loop exit
PB: predicated region body
PF: predicated region fallthrough
CT: control target
= control target key end

     0   :  { %8 = vsyncpa [#allocation3], 0  ;;  %s833_s0 = inlined_call_operand.hbm [shape: f32[2,16,128], index: 0, kind: input, shape index: {}]   ;;  %s834_s1 = inlined_call_operand.hbm [shape: f32[2,8,8], index: 1, kind: input, shape index: {}]   ;;  %s835_s2 = inlined_call_operand.vmem [shape: f32[2,1,8], index: 2, kind: input, shape index: {}]   ;;  %s836_s3 = inlined_call_operand.hbm [shape: f32[2,16,128], index: 3, kind: output, shape index: {}]  }
   0x1   :  { %9 = vsyncpa [#allocation6], 0 }
   0x2   :  { %10 = vsyncpa [#allocation4], 0  ;;  %s626_s12 = smov [#allocation2]   ;;  %s554_s16 = scalar_lea.hbm %s833_s0, 512 }
   0x3   :  { %s16_s13 = sshll.u32 %s626_s12, 4  ;;  %p555_p0 = scmp.ne.s32.totalorder %s833_s0, %s554_s16  ;;  %s17_s13 = int_to_ptr.vmem [resolvable:$true] %s16_s13 }
   0x4   :  { %p558_p1 = scmp.lt.u32.totalorder %s554_s16, %s833_s0 }
   0x6   :  { %p560_p2 = pnand %p558_p1, %p555_p0 }
   0x8   :  { %563 = shalt.err (!%p560_p2)
}
   0x9   :  { %s564_s21 = scalar_lea.vmem %s17_s13, 512  ;;  %p569_p4 = scmp.lt.s32.totalorder %s17_s13, %s17_s13 }
   0xa   :  { %p565_p3 = scmp.ne.s32.totalorder %s17_s13, %s564_s21  ;;  %p570_p5 = scmp.lt.s32.totalorder %s564_s21, %s564_s21 }
   0xc   :  { %p571_p6 = por %p570_p5, %p569_p4 }
   0xe   :  { %p572_p7 = pnand %p571_p6, %p565_p3 }
  0x10   :  { %575 = shalt.err (!%p572_p7)
}
  0x11   :  { %s627_s22 = smov 128   ;;  %s628_s23 = smov 8  }
  0x12   :  { %22 = dma.hbm_to_vmem [thread:$0]  %s833_s0, 512, %s17_s13, [#allocation3], %s627_s22, %s627_s22, %s628_s23  }
  0x13   :  { %s629_s26 = smov [#allocation5]   ;;  %s576_s30 = scalar_lea.hbm %s834_s1, 256 }
  0x14   :  { %s28_s27 = sshll.u32 %s629_s26, 4  ;;  %p577_p8 = scmp.ne.s32.totalorder %s834_s1, %s576_s30  ;;  %s29_s27 = int_to_ptr.vmem [resolvable:$true] %s28_s27 }
  0x15   :  { %p580_p9 = scmp.lt.u32.totalorder %s576_s30, %s834_s1 }
  0x17   :  { %p582_p10 = pnand %p580_p9, %p577_p8 }
  0x19   :  { %585 = shalt.err (!%p582_p10)
}
  0x1a   :  { %s586_s8 = scalar_lea.vmem %s29_s27, 256  ;;  %p591_p12 = scmp.lt.s32.totalorder %s29_s27, %s29_s27 }
  0x1b   :  { %p587_p11 = scmp.ne.s32.totalorder %s29_s27, %s586_s8  ;;  %p592_p13 = scmp.lt.s32.totalorder %s586_s8, %s586_s8 }
  0x1d   :  { %p593_p0 = por %p592_p13, %p591_p12 }
  0x1f   :  { %p594_p1 = pnand %p593_p0, %p587_p11 }
  0x21   :  { %597 = shalt.err (!%p594_p1)
}
  0x22   :  { %34 = dma.hbm_to_vmem [thread:$0]  %s834_s1, 256, %s29_s27, [#allocation6], %s627_s22, %s627_s22, %s628_s23  }
  0x23   :  { %620 = dma.done.wait [#allocation3], 512  }
  0x24   :  { %621 = vsyncadd [#allocation3], 4294966784 }
  0x25   :  { %622 = dma.done.wait [#allocation6], 256  }
  0x26   :  { %623 = vsyncadd [#allocation6], 4294967040  ;;  %v698_v0 = vld [vmem:[#allocation2 + $0x10] sm:$0xff]  ;;  %v700_v1 = vld [vmem:[#allocation2 + $0x18] sm:$0xff]  ;;  %s630_s1 = smov 104   ;;  %s631_s10 = smov 120   ;;  %v176_v42 = vlaneseq }
  0x27   :  { %v54_v2 = vadd.f32 %v700_v1, %v698_v0  ;;  %v704_v4 = vld [vmem:[#allocation2] sm:$0xff]  ;;  %v706_v5 = vld [vmem:[#allocation2 + $0x8] sm:$0xff]  ;;  %s632_s11 = smov 96   ;;  %s633_s12 = smov 112   ;;  %vm124_vm0 = vcmask 1041409   ;;  %vm272_vm1 = vcmask 64512  }
  0x28   :  { %v47_v8 = vadd.f32 %v706_v5, %v704_v4  ;;  %s634_s13 = smov 80   ;;  %s635_s14 = smov 88   ;;  %v644_v40 = vmov 1983009808   ;;  %v751_v50 = vshrl.u32 %v176_v42, 7  ;;  %vm432_vm2 = vcmask 130048  }
  0x29   :  { %v55_v3 = vrot.slane %v54_v2, 4  ;;  %s636_s15 = smov 64   ;;  %s637_s16 = smov 72   ;;  %v174_v41 = vunpack.c.l.s4 %v644_v40  ;;  %vm434_vm3 = vcmask 195584   ;;  %vm436_vm4 = vcmask 261120  }
  0x2a   :  { %v48_v11 = vrot.slane %v47_v8, 4  ;;  %s638_s17 = smov 48   ;;  %s639_s18 = smov 56   ;;  %vm438_vm5 = vcmask 326656   ;;  %vm440_vm6 = vcmask 392192   ;;  %vm442_vm7 = vcmask 457728  }
  0x2b   :  { %v56_v6 = vadd.f32 %v55_v3, %v54_v2  ;;  %s640_s19 = smov 32   ;;  %s641_s20 = smov 40   ;;  %v175_v49 = vunpack.c.0.s8 %v174_v41  ;;  %vm444_vm8 = vcmask 523264   ;;  %vm446_vm9 = vcmask 588800  }
  0x2c   :  { %v49_v13 = vadd.f32 %v48_v11, %v47_v8  ;;  %s642_s21 = smov 16   ;;  %s643_s24 = smov 24   ;;  %vm448_vm10 = vcmask 654336   ;;  %vm450_vm11 = vcmask 719872   ;;  %vm452_vm12 = vcmask 785408  }
  0x2d   :  { %v57_v7 = vrot.slane %v56_v6, 2  ;;  %vm454_vm13 = vcmask 850944   ;;  %vm456_vm14 = vcmask 916480   ;;  %vm458_vm15 = vcmask 982016  }
  0x2e   :  { %v50_v14 = vrot.slane %v49_v13, 2 }
  0x2f   :  { %v58_v9 = vadd.f32 %v57_v7, %v56_v6 }
  0x30   :  { %v51_v15 = vadd.f32 %v50_v14, %v49_v13  ;;  %v178_v13 = vsub.s32 %v175_v49, %v751_v50 }
  0x31   :  { %v59_v10 = vrot.slane %v58_v9, 1 }
  0x32   :  { %v52_v16 = vrot.slane %v51_v15, 1 }
  0x33   :  { %v60_v12 = vadd.f32 %v59_v10, %v58_v9 }
  0x34   :  { %v53_v18 = vadd.f32 %v52_v16, %v51_v15  ;;  %v645_v15 = vmov 1934713408  }
  0x35   :  { %73 = vrot.lane.b32.xlu1 %v60_v12, %s630_s1  ;;  %65 = vrot.lane.b32.xlu0 %v60_v12, %s631_s10  ;;  %v123_v17 = vrot.slane %v60_v12, 7  ;;  %v206_v16 = vunpack.c.l.s4 %v645_v15 }
  0x37   :  { %v721_v19 = vsel %vm124_vm0, %v123_v17, %v53_v18 }
  0x39   :  { %77 = vrot.lane.b32.xlu1 %v60_v12, %s632_s11  ;;  %69 = vrot.lane.b32.xlu0 %v60_v12, %s633_s12 }
  0x3d   :  { %85 = vrot.lane.b32.xlu1 %v60_v12, %s634_s13  ;;  %81 = vrot.lane.b32.xlu0 %v60_v12, %s635_s14 }
  0x41   :  { %93 = vrot.lane.b32.xlu1 %v60_v12, %s636_s15  ;;  %89 = vrot.lane.b32.xlu0 %v60_v12, %s637_s16 }
  0x45   :  { %101 = vrot.lane.b32.xlu1 %v60_v12, %s638_s17  ;;  %97 = vrot.lane.b32.xlu0 %v60_v12, %s639_s18 }
  0x49   :  { %109 = vrot.lane.b32.xlu1 %v60_v12, %s640_s19  ;;  %105 = vrot.lane.b32.xlu0 %v60_v12, %s641_s20 }
  0x4d   :  { %117 = vrot.lane.b32.xlu1 %v60_v12, %s642_s21  ;;  %113 = vrot.lane.b32.xlu0 %v60_v12, %s643_s24 }
  0x51   :  { %121 = vrot.lane.b32.xlu0 %v60_v12, %s628_s23  ;;  %63 = vrot.lane.b32.xlu1 %v53_v18, %s631_s10 }
  0x55   :  { %67 = vrot.lane.b32.xlu0 %v53_v18, %s633_s12  ;;  %71 = vrot.lane.b32.xlu1 %v53_v18, %s630_s1 }
  0x59   :  { %75 = vrot.lane.b32.xlu0 %v53_v18, %s632_s11  ;;  %79 = vrot.lane.b32.xlu1 %v53_v18, %s635_s14 }
  0x5d   :  { %83 = vrot.lane.b32.xlu0 %v53_v18, %s634_s13  ;;  %87 = vrot.lane.b32.xlu1 %v53_v18, %s637_s16 }
  0x61   :  { %91 = vrot.lane.b32.xlu0 %v53_v18, %s636_s15  ;;  %95 = vrot.lane.b32.xlu1 %v53_v18, %s639_s18 }
  0x65   :  { %99 = vrot.lane.b32.xlu0 %v53_v18, %s638_s17  ;;  %103 = vrot.lane.b32.xlu1 %v53_v18, %s641_s20 }
  0x69   :  { %107 = vrot.lane.b32.xlu0 %v53_v18, %s640_s19  ;;  %111 = vrot.lane.b32.xlu1 %v53_v18, %s643_s24 }
  0x6d   :  { %115 = vrot.lane.b32.xlu0 %v53_v18, %s642_s21  ;;  %119 = vrot.lane.b32.xlu1 %v53_v18, %s628_s23 }
  0xa7   :  { %v74_v20 = vpop.permute.xlu1 %73  ;;  %v66_v21 = vpop.permute.xlu0 %65 }
  0xa8   :  { %v130_v47 = vrot.slane %v74_v20, 7  ;;  %v126_v57 = vrot.slane %v66_v21, 7 }
  0xab   :  { %v78_v22 = vpop.permute.xlu1 %77  ;;  %v70_v23 = vpop.permute.xlu0 %69 }
  0xac   :  { %v132_v48 = vrot.slane %v78_v22, 7  ;;  %v128_v53 = vrot.slane %v70_v23, 7 }
  0xaf   :  { %v86_v24 = vpop.permute.xlu1 %85  ;;  %v82_v25 = vpop.permute.xlu0 %81 }
  0xb0   :  { %v136_v45 = vrot.slane %v86_v24, 7  ;;  %v134_v54 = vrot.slane %v82_v25, 7 }
  0xb3   :  { %v94_v26 = vpop.permute.xlu1 %93  ;;  %v90_v27 = vpop.permute.xlu0 %89 }
  0xb4   :  { %v138_v46 = vrot.slane %v90_v27, 7  ;;  %v140_v2 = vrot.slane %v94_v26, 7 }
  0xb7   :  { %v102_v28 = vpop.permute.xlu1 %101  ;;  %v98_v29 = vpop.permute.xlu0 %97 }
  0xb8   :  { %v144_v58 = vrot.slane %v102_v28, 7  ;;  %v142_v9 = vrot.slane %v98_v29, 7  ;;  %v207_v28 = vunpack.c.0.s8 %v206_v16 }
  0xbb   :  { %v743_v30 = vpop.permute.xlu1 %109  ;;  %v106_v31 = vpop.permute.xlu0 %105 }
  0xbc   :  { %v146_v59 = vrot.slane %v106_v31, 7  ;;  %v148_v31 = vrot.slane %v743_v30, 7  ;;  %v210_v30 = vsub.s32 %v207_v28, %v751_v50 }
  0xbf   :  { %v745_v32 = vpop.permute.xlu1 %117  ;;  %v747_v33 = vpop.permute.xlu0 %113 }
  0xc3   :  { %v749_v34 = vpop.permute.xlu0 %121  ;;  %v64_v35 = vpop.permute.xlu1 %63 }
  0xc4   :  { %v127_v10 = vsel %vm124_vm0, %v126_v57, %v64_v35  ;;  %v150_v35 = vrot.slane %v747_v33, 7 }
  0xc7   :  { %v68_v36 = vpop.permute.xlu0 %67  ;;  %v72_v37 = vpop.permute.xlu1 %71 }
  0xc8   :  { %v129_v60 = vsel %vm124_vm0, %v128_v53, %v68_v36  ;;  %v131_v61 = vsel %vm124_vm0, %v130_v47, %v72_v37  ;;  %v154_v36 = vrot.slane %v749_v34, 7 }
  0xc9   :  { %v172_v14 = vcombine.low %v721_v19, %v129_v60  ;;  %v180_v17 = vcombine.low %v127_v10, %v131_v61  ;;  %v152_v19 = vrot.slane %v745_v32, 7 }
  0xcb   :  { %v76_v38 = vpop.permute.xlu0 %75  ;;  %v80_v39 = vpop.permute.xlu1 %79  ;;  %v179_v27 = vrot.slane %v172_v14, %v178_v13  ;;  %v187_v29 = vrot.slane %v180_v17, %v178_v13 }
  0xcc   :  { %v133_v62 = vsel %vm124_vm0, %v132_v48, %v76_v38  ;;  %v135_v63 = vsel %vm124_vm0, %v134_v54, %v80_v39 }
  0xcd   :  { %v204_v32 = vcombine.low %v179_v27, %v187_v29 }
  0xcf   :  { %v84_v43 = vpop.permute.xlu0 %83  ;;  %v88_v44 = vpop.permute.xlu1 %87 }
  0xd0   :  { %v137_v55 = vsel %vm124_vm0, %v136_v45, %v84_v43  ;;  %v139_v56 = vsel %vm124_vm0, %v138_v46, %v88_v44 }
  0xd1   :  { %v188_v3 = vcombine.low %v133_v62, %v137_v55  ;;  %v196_v6 = vcombine.low %v135_v63, %v139_v56 }
  0xd3   :  { %v92_v51 = vpop.permute.xlu0 %91  ;;  %v96_v52 = vpop.permute.xlu1 %95  ;;  %v195_v21 = vrot.slane %v188_v3, %v178_v13  ;;  %v203_v22 = vrot.slane %v196_v6, %v178_v13 }
  0xd4   :  { %v141_v18 = vsel %vm124_vm0, %v140_v2, %v92_v51  ;;  %v143_v20 = vsel %vm124_vm0, %v142_v9, %v96_v52  ;;  %v211_v51 = vrot.slane %v204_v32, %v210_v30 }
  0xd5   :  { %v212_v37 = vcombine.low %v195_v21, %v203_v22 }
  0xd7   :  { %v100_v7 = vpop.permute.xlu0 %99  ;;  %v104_v8 = vpop.permute.xlu1 %103  ;;  %v219_v47 = vrot.slane %v212_v37, %v210_v30 }
  0xd8   :  { %v145_v11 = vsel %vm124_vm0, %v144_v58, %v100_v7  ;;  %v147_v12 = vsel %vm124_vm0, %v146_v59, %v104_v8 }
  0xd9   :  { %v222_v23 = vcombine.low %v141_v18, %v145_v11  ;;  %v230_v24 = vcombine.low %v143_v20, %v147_v12  ;;  %v220_v53 = vcombine.low %v211_v51, %v219_v47  ;;  %v221_v54 = vcombine.high %v211_v51, %v219_v47  ;;  %v293_v20 = vld [vmem:[#allocation5] sm:$0xff]  ;;  %v295_v47 = vld [vmem:[#allocation5 + $0x8] sm:$0xff] }
  0xdb   :  { %v108_v25 = vpop.permute.xlu0 %107  ;;  %v112_v26 = vpop.permute.xlu1 %111  ;;  %v229_v38 = vrot.slane %v222_v23, %v178_v13  ;;  %v237_v39 = vrot.slane %v230_v24, %v178_v13  ;;  %v282_v59 = vsel %vm272_vm1, %v221_v54, 0.0  ;;  %v273_v61 = vsel %vm272_vm1, %v220_v53, 0.0 }
  0xdc   :  { %v149_v42 = vsel %vm124_vm0, %v148_v31, %v108_v25  ;;  %v151_v43 = vsel %vm124_vm0, %v150_v35, %v112_v26 }
  0xdd   :  { %v254_v34 = vcombine.low %v229_v38, %v237_v39 }
  0xdf   :  { %v116_v40 = vpop.permute.xlu0 %115  ;;  %v120_v41 = vpop.permute.xlu1 %119  ;;  %v261_v55 = vrot.slane %v254_v34, %v210_v30 }
  0xe0   :  { %v153_v44 = vsel %vm124_vm0, %v152_v19, %v116_v40  ;;  %v155_v45 = vsel %vm124_vm0, %v154_v36, %v120_v41  ;;  %v520_v40 = vld [vmem:[%s835_s2] ss:$0 sm:$0xff] }
  0xe1   :  { %v238_v46 = vcombine.low %v149_v42, %v153_v44  ;;  %v246_v33 = vcombine.low %v151_v43, %v155_v45  ;;  %v785_v44 = vsub.s32 0, %v751_v50 }
  0xe3   :  { %v245_v48 = vrot.slane %v238_v46, %v178_v13  ;;  %v253_v49 = vrot.slane %v246_v33, %v178_v13 }
  0xe5   :  { %v262_v52 = vcombine.low %v245_v48, %v253_v49 }
  0xe7   :  { %v269_v56 = vrot.slane %v262_v52, %v210_v30 }
  0xe9   :  { %v270_v57 = vcombine.low %v261_v55, %v269_v56  ;;  %v271_v58 = vcombine.high %v261_v55, %v269_v56 }
  0xeb   :  { %v283_v60 = vsel %vm272_vm1, %v271_v58, 0.0  ;;  %v274_v62 = vsel %vm272_vm1, %v270_v57, 0.0 }
  0xec   :  { %v284_v63 = vadd.f32 %v283_v60, %v282_v59  ;;  %v275_v2 = vadd.f32 %v274_v62, %v273_v61 }
  0xee   :  { %v285_v3 = vrot.slane %v284_v63, 4  ;;  %v276_v6 = vrot.slane %v275_v2, 4 }
  0xf0   :  { %v286_v7 = vadd.f32 %v285_v3, %v284_v63  ;;  %v277_v8 = vadd.f32 %v276_v6, %v275_v2  ;;  %v521_v2 = vld [vmem:[%s835_s2 + $0x1] ss:$0 sm:$0xff]  ;;  %s647_s2 = smov [#allocation7]  }
  0xf1   :  { %s506_s29 = sshll.u32 %s647_s2, 4  ;;  %s507_s29 = int_to_ptr.vmem [resolvable:$true] %s506_s29 }
  0xf2   :  { %v287_v9 = vrot.slane %v286_v7, 2  ;;  %v278_v10 = vrot.slane %v277_v8, 2  ;;  %s598_s30 = scalar_lea.vmem %s507_s29, 512  ;;  %p603_p3 = scmp.lt.s32.totalorder %s507_s29, %s507_s29 }
  0xf3   :  { %p599_p2 = scmp.ne.s32.totalorder %s507_s29, %s598_s30  ;;  %p604_p4 = scmp.lt.s32.totalorder %s598_s30, %s598_s30 }
  0xf4   :  { %v288_v11 = vadd.f32 %v287_v9, %v286_v7  ;;  %v279_v12 = vadd.f32 %v278_v10, %v277_v8 }
  0xf5   :  { %p605_p5 = por %p604_p4, %p603_p3 }
  0xf6   :  { %v289_v13 = vrot.slane %v288_v11, 1  ;;  %v280_v14 = vrot.slane %v279_v12, 1 }
  0xf7   :  { %p606_p6 = pnand %p605_p5, %p599_p2 }
  0xf8   :  { %v290_v15 = vadd.f32 %v289_v13, %v288_v11  ;;  %v281_v16 = vadd.f32 %v280_v14, %v279_v12 }
  0xfa   :  { %v292_v17 = vmul.f32 0.00390625, %v290_v15  ;;  %v291_v18 = vmul.f32 0.00390625, %v281_v16 }
  0xfc   :  { %303 = vbcast.lane.b32.xlu0 %v292_v17, 256  ;;  %300 = vbcast.lane.b32.xlu1 %v291_v18, 256 }
 0x16e   :  { %v304_v21 = vpop.permute.xlu0 %303  ;;  %v301_v22 = vpop.permute.xlu1 %300 }
 0x16f   :  { %v306_v23 = vmul.f32 %v304_v21, %v293_v20  ;;  %v305_v24 = vmul.f32 %v301_v22, %v293_v20 }
 0x171   :  { %v314_v25 = vsel %vm272_vm1, %v306_v23, 0.0  ;;  %v307_v26 = vsel %vm272_vm1, %v305_v24, 0.0 }
 0x172   :  { %v315_v27 = vrot.slane %v314_v25, 4  ;;  %v308_v28 = vrot.slane %v307_v26, 4 }
 0x174   :  { %v316_v29 = vadd.f32 %v315_v27, %v314_v25  ;;  %v309_v31 = vadd.f32 %v308_v28, %v307_v26 }
 0x176   :  { %v317_v19 = vrot.slane %v316_v29, 2  ;;  %v310_v35 = vrot.slane %v309_v31, 2 }
 0x178   :  { %v318_v36 = vadd.f32 %v317_v19, %v316_v29  ;;  %v311_v37 = vadd.f32 %v310_v35, %v309_v31 }
 0x17a   :  { %v319_v38 = vrot.slane %v318_v36, 1  ;;  %v312_v39 = vrot.slane %v311_v37, 1 }
 0x17c   :  { %v320_v41 = vadd.f32 %v319_v38, %v318_v36  ;;  %v313_v42 = vadd.f32 %v312_v39, %v311_v37 }
 0x17e   :  { %v328_v43 = vadd.f32 %v520_v40, %v320_v41  ;;  %v327_v45 = vadd.f32 %v520_v40, %v313_v42  ;;  %v646_v42 = vmov 1966171168  }
 0x180   :  { %v330_v30 = vmax.f32 %v328_v43, 0.0  ;;  %v329_v32 = vmax.f32 %v327_v45, 0.0  ;;  %v462_v43 = vunpack.c.l.s4 %v646_v42 }
 0x182   :  { %v341_v46 = vrot.slane %v330_v30, %v785_v44  ;;  %v334_v33 = vrot.slane %v329_v32, %v785_v44 }
 0x184   :  { %343 = vbcast.lane.b32.xlu0 %v341_v46, 256  ;;  %336 = vbcast.lane.b32.xlu1 %v334_v33, 256  ;;  %v463_v33 = vunpack.c.0.s8 %v462_v43 }
 0x1f6   :  { %v344_v34 = vpop.permute.xlu0 %343  ;;  %v337_v48 = vpop.permute.xlu1 %336 }
 0x1f7   :  { %v346_v49 = vmul.f32 %v344_v34, %v295_v47  ;;  %v345_v51 = vmul.f32 %v337_v48, %v295_v47 }
 0x1f9   :  { %v354_v52 = vsel %vm272_vm1, %v346_v49, 0.0  ;;  %v347_v53 = vsel %vm272_vm1, %v345_v51, 0.0  ;;  %v466_v51 = vsub.s32 %v463_v33, %v751_v50 }
 0x1fa   :  { %v355_v54 = vrot.slane %v354_v52, 4  ;;  %v348_v55 = vrot.slane %v347_v53, 4 }
 0x1fc   :  { %v356_v56 = vadd.f32 %v355_v54, %v354_v52  ;;  %v349_v57 = vadd.f32 %v348_v55, %v347_v53 }
 0x1fe   :  { %v357_v58 = vrot.slane %v356_v56, 2  ;;  %v350_v59 = vrot.slane %v349_v57, 2 }
 0x200   :  { %v358_v60 = vadd.f32 %v357_v58, %v356_v56  ;;  %v351_v61 = vadd.f32 %v350_v59, %v349_v57 }
 0x202   :  { %v359_v62 = vrot.slane %v358_v60, 1  ;;  %v352_v63 = vrot.slane %v351_v61, 1 }
 0x204   :  { %v360_v3 = vadd.f32 %v359_v62, %v358_v60  ;;  %v353_v6 = vadd.f32 %v352_v63, %v351_v61 }
 0x206   :  { %v368_v7 = vadd.f32 %v521_v2, %v360_v3  ;;  %v367_v8 = vadd.f32 %v521_v2, %v353_v6 }
 0x208   :  { %v523_v9 = vmul.f32 -1.442695, %v368_v7  ;;  %v522_v10 = vmul.f32 -1.442695, %v367_v8 }
 0x20a   :  { %546 = vpow2.f32 %v523_v9 }
 0x20b   :  { %548 = vpow2.f32 %v522_v10 }
 0x214   :  { %v547_v11 = vpop.eup %546 }
 0x215   :  { %v549_v12 = vpop.eup %548  ;;  %v376_v13 = vadd.f32 1.0, %v547_v11 }
 0x216   :  { %v375_v14 = vadd.f32 1.0, %v549_v12 }
 0x217   :  { %550 = vrcp.f32 %v376_v13 }
 0x218   :  { %552 = vrcp.f32 %v375_v14 }
 0x221   :  { %v551_v15 = vpop.eup %550 }
 0x222   :  { %v383_v16 = vrot.slane %v551_v15, 7  ;;  %v553_v17 = vpop.eup %552 }
 0x224   :  { %v384_v18 = vsel %vm124_vm0, %v383_v16, %v553_v17 }
 0x225   :  { %389 = vrot.lane.b32.xlu1 %v384_v18, %s642_s21  ;;  %386 = vrot.lane.b32.xlu0 %v384_v18, %s628_s23 }
 0x229   :  { %395 = vrot.lane.b32.xlu1 %v384_v18, %s640_s19  ;;  %392 = vrot.lane.b32.xlu0 %v384_v18, %s643_s24 }
 0x22d   :  { %401 = vrot.lane.b32.xlu1 %v384_v18, %s638_s17  ;;  %398 = vrot.lane.b32.xlu0 %v384_v18, %s641_s20 }
 0x231   :  { %407 = vrot.lane.b32.xlu1 %v384_v18, %s636_s15  ;;  %404 = vrot.lane.b32.xlu0 %v384_v18, %s639_s18 }
 0x235   :  { %413 = vrot.lane.b32.xlu1 %v384_v18, %s634_s13  ;;  %410 = vrot.lane.b32.xlu0 %v384_v18, %s637_s16 }
 0x239   :  { %419 = vrot.lane.b32.xlu1 %v384_v18, %s632_s11  ;;  %416 = vrot.lane.b32.xlu0 %v384_v18, %s635_s14 }
 0x23d   :  { %425 = vrot.lane.b32.xlu1 %v384_v18, %s633_s12  ;;  %422 = vrot.lane.b32.xlu0 %v384_v18, %s630_s1 }
 0x241   :  { %428 = vrot.lane.b32.xlu0 %v384_v18, %s631_s10 }
 0x297   :  { %v390_v20 = vpop.permute.xlu1 %389  ;;  %v387_v21 = vpop.permute.xlu0 %386 }
 0x298   :  { %v431_v22 = vsel %vm272_vm1, %v384_v18, %v387_v21 }
 0x299   :  { %v433_v24 = vsel %vm432_vm2, %v431_v22, %v390_v20 }
 0x29b   :  { %v396_v23 = vpop.permute.xlu1 %395  ;;  %v393_v25 = vpop.permute.xlu0 %392 }
 0x29c   :  { %v435_v26 = vsel %vm434_vm3, %v433_v24, %v393_v25 }
 0x29d   :  { %v437_v28 = vsel %vm436_vm4, %v435_v26, %v396_v23 }
 0x29f   :  { %v402_v27 = vpop.permute.xlu1 %401  ;;  %v399_v29 = vpop.permute.xlu0 %398 }
 0x2a0   :  { %v439_v31 = vsel %vm438_vm5, %v437_v28, %v399_v29 }
 0x2a1   :  { %v441_v35 = vsel %vm440_vm6, %v439_v31, %v402_v27 }
 0x2a3   :  { %v408_v19 = vpop.permute.xlu1 %407  ;;  %v405_v36 = vpop.permute.xlu0 %404 }
 0x2a4   :  { %v443_v37 = vsel %vm442_vm7, %v441_v35, %v405_v36 }
 0x2a5   :  { %v445_v39 = vsel %vm444_vm8, %v443_v37, %v408_v19 }
 0x2a7   :  { %v414_v38 = vpop.permute.xlu1 %413  ;;  %v411_v40 = vpop.permute.xlu0 %410 }
 0x2a8   :  { %v447_v41 = vsel %vm446_vm9, %v445_v39, %v411_v40 }
 0x2a9   :  { %v449_v30 = vsel %vm448_vm10, %v447_v41, %v414_v38 }
 0x2ab   :  { %v420_v45 = vpop.permute.xlu1 %419  ;;  %v417_v32 = vpop.permute.xlu0 %416 }
 0x2ac   :  { %v451_v46 = vsel %vm450_vm11, %v449_v30, %v417_v32 }
 0x2ad   :  { %v453_v47 = vsel %vm452_vm12, %v451_v46, %v420_v45 }
 0x2af   :  { %v423_v34 = vpop.permute.xlu0 %422  ;;  %v426_v48 = vpop.permute.xlu1 %425 }
 0x2b0   :  { %v455_v49 = vsel %vm454_vm13, %v453_v47, %v423_v34 }
 0x2b1   :  { %v457_v52 = vsel %vm456_vm14, %v455_v49, %v426_v48 }
 0x2b3   :  { %v429_v53 = vpop.permute.xlu0 %428 }
 0x2b4   :  { %v459_v54 = vsel %vm458_vm15, %v457_v52, %v429_v53 }
 0x2b5   :  { %v467_v55 = vrot.slane %v459_v54, %v466_v51 }
 0x2b7   :  { %v468_v56 = vcombine.high %v467_v55, %v467_v55  ;;  %v475_v57 = vrot.slane %v467_v55, %v466_v51 }
 0x2b9   :  { %v482_v58 = vrot.slane %v468_v56, %v466_v51  ;;  %v486_v59 = vrot.slane %v475_v57, %v785_v44 }
 0x2bb   :  { %v490_v60 = vrot.slane %v482_v58, %v785_v44  ;;  %v493_v61 = vmul.f32 %v486_v59, %v704_v4  ;;  %v494_v62 = vmul.f32 %v486_v59, %v706_v5 }
 0x2bd   :  { %497 = vst [vmem:[#allocation7] sm:$0xff] %v493_v61  ;;  %498 = vst [vmem:[#allocation7 + $0x8] sm:$0xff] %v494_v62  ;;  %v495_v50 = vmul.f32 %v490_v60, %v698_v0  ;;  %v496_v63 = vmul.f32 %v490_v60, %v700_v1 }
 0x2bf   :  { %499 = vst [vmem:[#allocation7 + $0x10] sm:$0xff] %v495_v50  ;;  %500 = vst [vmem:[#allocation7 + $0x18] sm:$0xff] %v496_v63 }
 0x2c0   :  { %609 = shalt.err (!%p606_p6)
}
 0x2c1   :  { %s610_s6 = scalar_lea.hbm %s836_s3, 512 }
 0x2c2   :  { %p611_p7 = scmp.ne.s32.totalorder %s836_s3, %s610_s6  ;;  %p614_p8 = scmp.lt.u32.totalorder %s610_s6, %s836_s3 }
 0x2c4   :  { %p616_p9 = pnand %p614_p8, %p611_p7 }
 0x2c6   :  { %619 = shalt.err (!%p616_p9)
}
 0x2c7   :  { %512 = dma.vmem_to_hbm [thread:$0]  %s507_s29, 512, %s836_s3, [#allocation4], %s627_s22, %s627_s22, %s628_s23  }
 0x2c8   :  { %624 = dma.done.wait [#allocation4], 512  }
 0x2c9   :  { %625 = vsyncadd [#allocation4], 4294966784 }
 0x2ca   :  { %516 = vsyncpa [#allocation3], 1 }
 0x2cb   :  { %517 = vsyncpa [#allocation6], 1 }
 0x2cc   :  { %518 = vsyncpa [#allocation4], 1 }

</bundles_post_ra>
